<compile_context>
chip_gen: v7x
topology: tpu7x:2x2x1
jax: 0.10.0
libtpu: 0.0.40
codegen_flags: <defaults>
</compile_context>

<pallas_src>
from typing import NamedTuple

import numpy as np
import jax
import jax.numpy as jnp
from jax.experimental import pallas as pl
from jax.experimental.pallas import tpu as pltpu


def _round_up(v, m):
    return ((v + m - 1) // m) * m


def _vmem_budget_bytes():
    """Usable VMEM budget for tiles (leave headroom for the compiler)."""
    try:
        cap = pltpu.get_tpu_info().vmem_capacity_bytes
    except Exception:  # pragma: no cover - robust fallback
        cap = 64 << 20
    return int(cap * 0.70)


# ---------------------------------------------------------------------------
# Kernels
# ---------------------------------------------------------------------------
def _linear_bias_kernel(x_ref, w_ref, b_ref, o_ref):
    # Collapsed-K path.
    # x_ref: (tm, Kp)   w_ref: (Kp, tv)   b_ref: (1, tv)   o_ref: (tm, tv)
    acc = jnp.dot(x_ref[...], w_ref[...], preferred_element_type=jnp.float32)
    o_ref[...] = (acc + b_ref[...]).astype(o_ref.dtype)


def _linear_bias_kernel_ktiled(x_ref, w_ref, b_ref, o_ref, acc_ref):
    # Fallback path (K too large for resident tiles): K reduction innermost.
    # x_ref: (tm, tk)   w_ref: (tk, tv)   b_ref: (1, tv)   o_ref/acc: (tm, tv)
    k = pl.program_id(2)

    @pl.when(k == 0)
    def _():
        acc_ref[...] = jnp.zeros_like(acc_ref)

    acc_ref[...] += jnp.dot(x_ref[...], w_ref[...],
                            preferred_element_type=jnp.float32)

    @pl.when(k == pl.num_programs(2) - 1)
    def _():
        o_ref[...] = (acc_ref[...] + b_ref[...]).astype(o_ref.dtype)


# ---------------------------------------------------------------------------
# Weight preparation (done once, reused across forward calls)
# ---------------------------------------------------------------------------
class PreparedLinear(NamedTuple):
    wT_padded: jax.Array   # (Kp, Vp), compute dtype (bf16 by default), pre-transposed
    b_padded: jax.Array    # (1, Vp), float32
    V: int
    K: int
    tv: int
    tk: int


def prepare_linear(w, b, *, compute_dtype=jnp.bfloat16, tv=512, tk=512):
    """Pad/cast/transpose a (V, K) weight + (V,) bias ONCE so per-forward
    calls do no HBM re-copy (and no per-tile relayout) of the tied weight."""
    V, K = w.shape
    tv = min(tv, _round_up(V, 128))     # lane-dense, multiple of 128
    tk = min(tk, _round_up(K, 128))
    Vp = _round_up(V, tv)
    Kp = _round_up(K, tk)
    wT = jnp.zeros((Kp, Vp), compute_dtype).at[:K, :V].set(
        jnp.transpose(w).astype(compute_dtype))
    b_p = jnp.zeros((1, Vp), jnp.float32).at[0, :V].set(b.astype(jnp.float32))
    return PreparedLinear(wT, b_p, V, K, tv, tk)


# ---------------------------------------------------------------------------
# Tiled linear:  out = x @ W.T + b   -> (M, V)
# ---------------------------------------------------------------------------
def linear_pallas(x, prep: PreparedLinear, *, tm=512,
                  compute_dtype=jnp.bfloat16, out_dtype=jnp.float32):
    M, K = x.shape
    assert K == prep.K, f"hidden-dim mismatch: {K} vs {prep.K}"
    Kp, Vp = prep.wT_padded.shape
    tv = prep.tv
    in_bytes = jnp.dtype(compute_dtype).itemsize
    out_bytes = jnp.dtype(out_dtype).itemsize
    budget = _vmem_budget_bytes()

    # Row tile: multiple of 16 (bf16 sublane packing), no larger than needed.
    tm = max(16, min(tm, _round_up(max(M, 1), 16)))

    def collapsed_vmem(tm_):
        # double-buffered x, W, bias, out
        return 2 * ((tm_ * Kp + Kp * tv) * in_bytes
                    + tv * 4 + tm_ * tv * out_bytes)

    # Shrink tm (never below 16) until the collapsed-K tiles fit the budget.
    while tm > 16 and collapsed_vmem(tm) > budget:
        tm = max(16, (tm // 2) // 16 * 16)
    use_collapsed = collapsed_vmem(tm) <= budget

    Mp = _round_up(M, tm)
    x_c = x.astype(compute_dtype)
    if (Mp, Kp) != (M, K):
        x_c = jnp.zeros((Mp, Kp), compute_dtype).at[:M, :K].set(x_c)

    cost = pl.CostEstimate(
        flops=2 * Mp * Vp * Kp,
        transcendentals=0,
        bytes_accessed=(Mp * Kp * in_bytes           # x streamed ~once
                        + Vp * Kp * in_bytes         # W streamed exactly once
                        + Mp * Vp * out_bytes),      # logits writeback
    )

    if use_collapsed:
        # Grid: vocab-outer, rows-inner. W's block index is constant across
        # the inner row sweep -> each weight tile is DMA'd exactly once.
        grid = (Vp // tv, Mp // tm)
        vmem_limit = int(min(max(2 * collapsed_vmem(tm), 16 << 20), budget))
        out = pl.pallas_call(
            _linear_bias_kernel,
            out_shape=jax.ShapeDtypeStruct((Mp, Vp), out_dtype),
            grid_spec=pltpu.PrefetchScalarGridSpec(
                num_scalar_prefetch=0,
                grid=grid,
                in_specs=[
                    pl.BlockSpec((tm, Kp), lambda j, i: (i, 0)),   # x
                    pl.BlockSpec((Kp, tv), lambda j, i: (0, j)),   # W^T
                    pl.BlockSpec((1, tv), lambda j, i: (0, j)),    # bias
                ],
                out_specs=pl.BlockSpec((tm, tv), lambda j, i: (i, j)),
            ),
            compiler_params=pltpu.CompilerParams(
                dimension_semantics=("parallel", "parallel"),
                vmem_limit_bytes=vmem_limit,
            ),
            cost_estimate=cost,
        )(x_c, prep.wT_padded, prep.b_padded)
    else:
        # K-tiled accumulator fallback for very large hidden dims.
        tk = prep.tk
        grid = (Vp // tv, Mp // tm, Kp // tk)
        vmem_needed = (2 * (tm * tk + tk * tv) * in_bytes
                       + 2 * tv * 4 + 2 * tm * tv * out_bytes + tm * tv * 4)
        vmem_limit = int(min(max(2 * vmem_needed, 16 << 20), budget))
        out = pl.pallas_call(
            _linear_bias_kernel_ktiled,
            out_shape=jax.ShapeDtypeStruct((Mp, Vp), out_dtype),
            grid_spec=pltpu.PrefetchScalarGridSpec(
                num_scalar_prefetch=0,
                grid=grid,
                in_specs=[
                    pl.BlockSpec((tm, tk), lambda j, i, k: (i, k)),   # x
                    pl.BlockSpec((tk, tv), lambda j, i, k: (k, j)),   # W^T
                    pl.BlockSpec((1, tv), lambda j, i, k: (0, j)),    # bias
                ],
                out_specs=pl.BlockSpec((tm, tv), lambda j, i, k: (i, j)),
                scratch_shapes=[pltpu.VMEM((tm, tv), jnp.float32)],
            ),
            compiler_params=pltpu.CompilerParams(
                dimension_semantics=("parallel", "parallel", "arbitrary"),
                vmem_limit_bytes=vmem_limit,
            ),
            cost_estimate=cost,
        )(x_c, prep.wT_padded, prep.b_padded)

    # Trim padding to the module's exact output shape. (If the downstream
    # log-softmax were fused, one would instead keep the padded buffer with
    # -inf bias on padded columns to avoid this extra pass.)
    return out[:M, :prep.V]


# ---------------------------------------------------------------------------
# TiedAdaptiveSoftmax.forward
# ---------------------------------------------------------------------------
def prepare_tied_adaptive_softmax(weight, biases, split_w, split_b, cutoff, *,
                                  compute_dtype=jnp.bfloat16, tv=512, tk=512):
    """Concatenate head|split weights and pad/cast/transpose everything ONCE."""
    head_w = jnp.concatenate([weight[: cutoff[0]], split_w], axis=0)
    head_b = jnp.concatenate([biases[0], split_b], axis=0)
    head = prepare_linear(head_w, head_b, compute_dtype=compute_dtype, tv=tv, tk=tk)
    tails = [
        prepare_linear(weight[cutoff[i]: cutoff[i + 1]], biases[i + 1],
                       compute_dtype=compute_dtype, tv=tv, tk=tk)
        for i in range(len(cutoff) - 1)
    ]
    return dict(head=head, tails=tails, cutoff=tuple(cutoff))


def tied_adaptive_softmax_forward(x, params, target, *, tm=512,
                                  compute_dtype=jnp.bfloat16,
                                  out_dtype=jnp.float32):
    """Mirrors TiedAdaptiveSoftmax.forward(input, target).

    Returns:
      output[0]   : (N, cutoff[0] + len(cutoff) - 1)        -- [head | split] logits
      output[i+1] : (N_i, cutoff[i+1] - cutoff[i]) or None  -- tail cluster logits
                    for the rows whose target falls in cluster i.
    """
    cutoff = params["cutoff"]

    # Launch the head AND all tail matmuls (over all N rows) before touching
    # `target`: the tails are weight-streaming bound, so computing logits for
    # every row costs ~nothing, and no host round-trip serializes the device
    # work. The single sync below only determines per-cluster output shapes.
    # TODO(synk): fuse all tail clusters into one pallas_call via
    # PrefetchScalarGridSpec row-id prefetch + pl.Element row gather to keep
    # the whole forward jit-able end-to-end.
    head_out = linear_pallas(x, params["head"], tm=tm,
                             compute_dtype=compute_dtype, out_dtype=out_dtype)
    tail_full = [
        linear_pallas(x, params["tails"][i], tm=tm,
                      compute_dtype=compute_dtype, out_dtype=out_dtype)
        for i in range(len(cutoff) - 1)
    ]

    tgt = np.asarray(jax.device_get(target))
    outputs = [head_out]
    for i in range(len(cutoff) - 1):
        mask = (tgt >= cutoff[i]) & (tgt < cutoff[i + 1])
        if mask.any():
            ids = jnp.asarray(np.nonzero(mask)[0].astype(np.int32))
            outputs.append(jnp.take(tail_full[i], ids, axis=0))
        else:
            outputs.append(None)
    return outputs


# ---------------------------------------------------------------------------
# Reference (plain JAX, same bf16 streaming / f32 accumulation) for verification
# ---------------------------------------------------------------------------
def _reference_forward(x, weight, biases, split_w, split_b, cutoff, target,
                       compute_dtype=jnp.bfloat16):
    def lin(a, w, b):
        a = a.astype(compute_dtype).astype(jnp.float32)
        w = w.astype(compute_dtype).astype(jnp.float32)
        return a @ w.T + b.astype(jnp.float32)

    head = lin(x, weight[: cutoff[0]], biases[0])
    split = lin(x, split_w, split_b)
    outputs = [jnp.concatenate([head, split], axis=1)]
    tgt = np.asarray(jax.device_get(target))
    for i in range(len(cutoff) - 1):
        mask = (tgt >= cutoff[i]) & (tgt < cutoff[i + 1])
        if mask.any():
            ids = jnp.asarray(np.nonzero(mask)[0].astype(np.int32))
            outputs.append(lin(x[ids], weight[cutoff[i]: cutoff[i + 1]],
                               biases[i + 1]))
        else:
            outputs.append(None)
    return outputs


if __name__ == "__main__":
    # Small shapes consistent with the module: N tokens, hidden dim, tied vocab.
    N = 8                    # batch of token representations
    DIM = 32                 # hidden size (weight.shape[1])
    CUTOFF = [16, 32, 48]    # vocab buckets; num_words = 48, 2 tail clusters
    NUM_WORDS = CUTOFF[-1]
    N_CLUSTERS = len(CUTOFF) - 1

    key = jax.random.PRNGKey(0)
    k_x, k_w, k_sw, k_sb, k_t = jax.random.split(key, 5)

    x = jax.random.normal(k_x, (N, DIM), dtype=jnp.float32)
    # tied embedding weight [num_words, dim]
    weight = jax.random.normal(k_w, (NUM_WORDS, DIM), dtype=jnp.float32) * 0.1
    # biases: zeros, exactly like the module's __init__
    biases = [jnp.zeros((CUTOFF[0],), jnp.float32)]
    for i in range(N_CLUSTERS):
        biases.append(jnp.zeros((CUTOFF[i + 1] - CUTOFF[i],), jnp.float32))
    # split head: Linear(dim, n_clusters)
    split_w = jax.random.normal(k_sw, (N_CLUSTERS, DIM), dtype=jnp.float32) * 0.1
    split_b = jax.random.normal(k_sb, (N_CLUSTERS,), dtype=jnp.float32) * 0.1

    target = jax.random.randint(k_t, (N,), 0, NUM_WORDS)

    # prepare (pad/cast/transpose/concat) the weights once, then run forward
    params = prepare_tied_adaptive_softmax(weight, biases, split_w, split_b, CUTOFF)
    outs = tied_adaptive_softmax_forward(x, params, target)
    refs = _reference_forward(x, weight, biases, split_w, split_b, CUTOFF, target)

    for o in outs:
        if o is not None:
            jax.block_until_ready(o)

    # verify
    assert outs[0].shape == (N, CUTOFF[0] + N_CLUSTERS)
    for o, r in zip(outs, refs):
        if r is None:
            assert o is None
        else:
            assert o.shape == r.shape
            np.testing.assert_allclose(np.asarray(o), np.asarray(r),
                                       rtol=1e-2, atol=1e-2)

    print("KERNEL_OK")
</pallas_src>

<mosaic_0001>
module attributes {stable_mosaic.version = 11 : i64} {
  func.func @_linear_bias_kernel(%arg0: i32, %arg1: i32, %arg2: memref<16x128xbf16, #tpu.memory_space<vmem>>, %arg3: memref<128x128xbf16, #tpu.memory_space<vmem>>, %arg4: memref<1x128xf32, #tpu.memory_space<vmem>>, %arg5: memref<16x128xf32, #tpu.memory_space<vmem>>) attributes {dimension_semantics = [#tpu.dimension_semantics<parallel>, #tpu.dimension_semantics<parallel>], iteration_bounds = array<i64: 1, 1>, scalar_prefetch = 0 : i64, scratch_operands = 0 : i64, tpu.core_type = #tpu.core_type<tc>, window_params = [{transform_indices = @transform_0, window_bounds = array<i64: 16, 128>}, {transform_indices = @transform_1, window_bounds = array<i64: 128, 128>}, {transform_indices = @transform_2, window_bounds = array<i64: 1, 128>}, {transform_indices = @transform_3, window_bounds = array<i64: 16, 128>}]} {
    %c0 = arith.constant 0 : index
    %c0_0 = arith.constant 0 : index
    %0 = vector.load %arg2[%c0, %c0_0] : memref<16x128xbf16, #tpu.memory_space<vmem>>, vector<16x128xbf16>
    %c0_1 = arith.constant 0 : index
    %c0_2 = arith.constant 0 : index
    %1 = vector.load %arg3[%c0_1, %c0_2] : memref<128x128xbf16, #tpu.memory_space<vmem>>, vector<128x128xbf16>
    %cst = arith.constant dense<0.000000e+00> : vector<16x128xf32>
    %2 = tpu.matmul %0, %1, %cst {dimension_numbers = #tpu.dot_dimension_numbers<[1], [0], [0], [1], [0, 0, 1, 1], [], []>} : vector<16x128xbf16>, vector<128x128xbf16>, vector<16x128xf32> -> vector<16x128xf32>
    %c0_3 = arith.constant 0 : index
    %c0_4 = arith.constant 0 : index
    %3 = vector.load %arg4[%c0_3, %c0_4] : memref<1x128xf32, #tpu.memory_space<vmem>>, vector<1x128xf32>
    %4 = vector.broadcast %3 : vector<1x128xf32> to vector<16x128xf32>
    %5 = arith.addf %2, %4 : vector<16x128xf32>
    %c0_5 = arith.constant 0 : index
    %c0_6 = arith.constant 0 : index
    %6 = vector.load %arg5[%c0_5, %c0_6] : memref<16x128xf32, #tpu.memory_space<vmem>>, vector<16x128xf32>
    tpu.vector_store %arg5[%c0_5, %c0_6], %5 {strides = array<i32>} : memref<16x128xf32, #tpu.memory_space<vmem>>, vector<16x128xf32>,
    return
  }
  func.func @transform_0(%arg0: i32, %arg1: i32) -> (i32, i32) {
    %c0_i32 = arith.constant 0 : i32
    %c0_i32_0 = arith.constant 0 : i32
    return %arg1, %c0_i32 : i32, i32
  }
  func.func @transform_1(%arg0: i32, %arg1: i32) -> (i32, i32) {
    %c0_i32 = arith.constant 0 : i32
    %c0_i32_0 = arith.constant 0 : i32
    return %c0_i32, %arg0 : i32, i32
  }
  func.func @transform_2(%arg0: i32, %arg1: i32) -> (i32, i32) {
    %c0_i32 = arith.constant 0 : i32
    %c0_i32_0 = arith.constant 0 : i32
    return %c0_i32, %arg0 : i32, i32
  }
  func.func @transform_3(%arg0: i32, %arg1: i32) -> (i32, i32) {
    %c0_i32 = arith.constant 0 : i32
    return %arg1, %arg0 : i32, i32
  }
}

</mosaic_0001>

<bundles_post_ra>
// kernel: tpu_custom_call.1
= control target key start
LH: loop header
LB: loop body
LE: loop exit
PB: predicated region body
PF: predicated region fallthrough
CT: control target
= control target key end

     0   :  { %8 = vsyncpa [#allocation3], 0  ;;  %s381_s0 = inlined_call_operand.hbm [shape: bf16[16,128], index: 0, kind: input, shape index: {}]   ;;  %s382_s1 = inlined_call_operand.hbm [shape: bf16[128,128], index: 1, kind: input, shape index: {}]   ;;  %s383_s2 = inlined_call_operand.vmem [shape: f32[1,128], index: 2, kind: input, shape index: {}]   ;;  %s384_s3 = inlined_call_operand.hbm [shape: f32[16,128], index: 3, kind: output, shape index: {}]  }
   0x1   :  { %9 = vsyncpa [#allocation6], 0 }
   0x2   :  { %10 = vsyncpa [#allocation4], 0  ;;  %s313_s12 = smov [#allocation2]   ;;  %s241_s16 = scalar_lea.hbm %s381_s0, 128 }
   0x3   :  { %s16_s13 = sshll.u32 %s313_s12, 4  ;;  %p242_p0 = scmp.ne.s32.totalorder %s381_s0, %s241_s16  ;;  %s17_s13 = int_to_ptr.vmem [resolvable:$true] %s16_s13 }
   0x4   :  { %p245_p1 = scmp.lt.u32.totalorder %s241_s16, %s381_s0 }
   0x6   :  { %p247_p2 = pnand %p245_p1, %p242_p0 }
   0x8   :  { %250 = shalt.err (!%p247_p2)
}
   0x9   :  { %s251_s21 = scalar_lea.vmem %s17_s13, 128  ;;  %p256_p4 = scmp.lt.s32.totalorder %s17_s13, %s17_s13 }
   0xa   :  { %p252_p3 = scmp.ne.s32.totalorder %s17_s13, %s251_s21  ;;  %p257_p5 = scmp.lt.s32.totalorder %s251_s21, %s251_s21 }
   0xc   :  { %p258_p6 = por %p257_p5, %p256_p4 }
   0xe   :  { %p259_p7 = pnand %p258_p6, %p252_p3 }
  0x10   :  { %262 = shalt.err (!%p259_p7)
}
  0x11   :  { %s314_s22 = smov 64   ;;  %s315_s23 = smov 4  }
  0x12   :  { %22 = dma.hbm_to_vmem [thread:$0]  %s381_s0, 128, %s17_s13, [#allocation3], %s314_s22, %s314_s22, %s315_s23  }
  0x13   :  { %s316_s26 = smov [#allocation5]   ;;  %s263_s30 = scalar_lea.hbm %s382_s1, 1024 }
  0x14   :  { %s28_s27 = sshll.u32 %s316_s26, 4  ;;  %p264_p8 = scmp.ne.s32.totalorder %s382_s1, %s263_s30  ;;  %s29_s27 = int_to_ptr.vmem [resolvable:$true] %s28_s27 }
  0x15   :  { %p267_p9 = scmp.lt.u32.totalorder %s263_s30, %s382_s1 }
  0x17   :  { %p269_p10 = pnand %p267_p9, %p264_p8 }
  0x19   :  { %272 = shalt.err (!%p269_p10)
}
  0x1a   :  { %s273_s8 = scalar_lea.vmem %s29_s27, 1024  ;;  %p278_p12 = scmp.lt.s32.totalorder %s29_s27, %s29_s27 }
  0x1b   :  { %p274_p11 = scmp.ne.s32.totalorder %s29_s27, %s273_s8  ;;  %p279_p13 = scmp.lt.s32.totalorder %s273_s8, %s273_s8 }
  0x1d   :  { %p280_p0 = por %p279_p13, %p278_p12 }
  0x1f   :  { %p281_p1 = pnand %p280_p0, %p274_p11 }
  0x21   :  { %284 = shalt.err (!%p281_p1)
}
  0x22   :  { %34 = dma.hbm_to_vmem [thread:$0]  %s382_s1, 1024, %s29_s27, [#allocation6], %s314_s22, %s314_s22, %s315_s23  }
  0x23   :  { %307 = dma.done.wait [#allocation3], 128  }
  0x24   :  { %308 = vsyncadd [#allocation3], 4294967168 }
  0x25   :  { %309 = dma.done.wait [#allocation6], 1024  }
  0x26   :  { %310 = vsyncadd [#allocation6], 4294966272  ;;  %v317_v0 = vmov 0.0   ;;  %vm318_vm0 = vmmov 0   ;;  %v232_v1 = vld [vmem:[#allocation5] sm:$0xff]   ;;  %v233_v2 = vld [vmem:[#allocation5 + $0x8] sm:$0xff]  }
  0x27   :  { %203 = vmatprep.subr.bf16.mxu0 %v317_v0  ;;  %219 = vmatprep.mubr.msk.bf16.mxu0 %vm318_vm0, %v317_v0  ;;  %v234_v3 = vld [vmem:[#allocation5 + $0x10] sm:$0xff]   ;;  %v235_v4 = vld [vmem:[#allocation5 + $0x18] sm:$0xff]   ;;  %v236_v5 = vld [vmem:[#allocation5 + $0x20] sm:$0xff]   ;;  %s319_s11 = smov [#allocation7]  }
  0x28   :  { %204 = vmatpush3.bf16.msra.mxu0 %v232_v1  ;;  %v237_v6 = vld [vmem:[#allocation5 + $0x28] sm:$0xff]   ;;  %v238_v7 = vld [vmem:[#allocation5 + $0x30] sm:$0xff]   ;;  %v239_v8 = vld [vmem:[#allocation5 + $0x38] sm:$0xff]   ;;  %s171_s12 = sshll.u32 %s319_s11, 4  ;;  %s172_s12 = int_to_ptr.vmem [resolvable:$true] %s171_s12 }
  0x29   :  { %205 = vmatprep.subr.bf16.mxu0 %v317_v0  ;;  %v240_v9 = vld [vmem:[#allocation2] sm:$0xff]   ;;  %s285_s13 = scalar_lea.vmem %s172_s12, 256  ;;  %p290_p3 = scmp.lt.s32.totalorder %s172_s12, %s172_s12 }
  0x2a   :  { %v184_v10 = vld [vmem:[%s383_s2] ss:$0 sm:$0xff]  ;;  %p286_p2 = scmp.ne.s32.totalorder %s172_s12, %s285_s13  ;;  %p291_p4 = scmp.lt.s32.totalorder %s285_s13, %s285_s13 }
  0x2c   :  { %206 = vmatpush3.bf16.msra.mxu0 %v233_v2  ;;  %p292_p5 = por %p291_p4, %p290_p3 }
  0x2d   :  { %207 = vmatprep.subr.bf16.mxu0 %v317_v0 }
  0x2e   :  { %p293_p6 = pnand %p292_p5, %p286_p2 }
  0x30   :  { %208 = vmatpush3.bf16.msra.mxu0 %v234_v3 }
  0x31   :  { %209 = vmatprep.subr.bf16.mxu0 %v317_v0 }
  0x34   :  { %210 = vmatpush3.bf16.msra.mxu0 %v235_v4 }
  0x35   :  { %211 = vmatprep.subr.bf16.mxu0 %v317_v0 }
  0x38   :  { %212 = vmatpush3.bf16.msra.mxu0 %v236_v5 }
  0x39   :  { %213 = vmatprep.subr.bf16.mxu0 %v317_v0 }
  0x3c   :  { %214 = vmatpush3.bf16.msra.mxu0 %v237_v6 }
  0x3d   :  { %215 = vmatprep.subr.bf16.mxu0 %v317_v0 }
  0x40   :  { %216 = vmatpush3.bf16.msra.mxu0 %v238_v7 }
  0x41   :  { %217 = vmatprep.subr.bf16.mxu0 %v317_v0 }
  0x44   :  { %218 = vmatpush3.bf16.msra.mxu0 %v239_v8 }
  0x47   :  { %220 = vmatmul.mubr.bf16.vlgmr.msra.gmra.mrb[0].mxu0 %v240_v9 }
 0x11a   :  { %v157_v11 = vpop.f32.mrb[0].mxu0 }
 0x11b   :  { %v158_v12 = vadd.f32 %v184_v10, %v157_v11  ;;  %v221_v13 = vpop.f32.mrb[1].mxu0 }
 0x11c   :  { %v160_v14 = vpop.f32.mrb[2].mxu0 }
 0x11d   :  { %164 = vst [vmem:[#allocation7] sm:$0xff] %v158_v12  ;;  %v161_v15 = vadd.f32 %v184_v10, %v160_v14  ;;  %v222_v16 = vpop.f32.mrb[3].mxu0 }
 0x11f   :  { %165 = vst [vmem:[#allocation7 + $0x8] sm:$0xff] %v161_v15 }
 0x120   :  { %296 = shalt.err (!%p293_p6)
}
 0x121   :  { %s297_s15 = scalar_lea.hbm %s384_s3, 256 }
 0x122   :  { %p298_p7 = scmp.ne.s32.totalorder %s384_s3, %s297_s15  ;;  %p301_p8 = scmp.lt.u32.totalorder %s297_s15, %s384_s3 }
 0x124   :  { %p303_p9 = pnand %p301_p8, %p298_p7 }
 0x126   :  { %306 = shalt.err (!%p303_p9)
}
 0x127   :  { %s320_s20 = smov 128   ;;  %s321_s21 = smov 8  }
 0x128   :  { %177 = dma.vmem_to_hbm [thread:$0]  %s172_s12, 256, %s384_s3, [#allocation4], %s320_s20, %s320_s20, %s321_s21  }
 0x129   :  { %311 = dma.done.wait [#allocation4], 256  }
 0x12a   :  { %312 = vsyncadd [#allocation4], 4294967040 }
 0x12b   :  { %181 = vsyncpa [#allocation3], 1 }
 0x12c   :  { %182 = vsyncpa [#allocation6], 1 }
 0x12d   :  { %183 = vsyncpa [#allocation4], 1 }

</bundles_post_ra>
